<compile_context>
chip_gen: v5e
topology: v5e:2x2
jax: 0.10.0
libtpu: 0.0.40
codegen_flags: <defaults>
</compile_context>

<pallas_src>
import math

import jax
import jax.numpy as jnp
from jax import lax
from jax.experimental import pallas as pl
from jax.experimental.pallas import tpu as pltpu


def _exact_gelu(x):
    # PyTorch F.gelu default: exact erf formulation (computed in f32).
    return 0.5 * x * (1.0 + lax.erf(x * (1.0 / math.sqrt(2.0))))


def _round_up(x, m):
    return ((x + m - 1) // m) * m


def feedforward_kernel(x_ref, w1v_ref, w1g_ref, b1v_ref, b1g_ref,
                       w2_ref, b2_ref, o_ref):
    k = pl.program_id(1)

    x = x_ref[...]                                              # (TM, Dp) bf16

    # First Linear, split into value / gate halves (two lane-dense bf16 dots,
    # f32 accumulation on the MXU).
    val = jnp.dot(x, w1v_ref[...],
                  preferred_element_type=jnp.float32) + b1v_ref[...]   # (TM, TH)
    gates = jnp.dot(x, w1g_ref[...],
                    preferred_element_type=jnp.float32) + b1g_ref[...]  # (TM, TH)

    # GEGLU in f32; Dropout(p=0.0) is identity. Cast to bf16 for the MXU.
    g = (val * _exact_gelu(gates)).astype(jnp.bfloat16)         # (TM, TH)

    # Second Linear partial product for this hidden tile.
    part = jnp.dot(g, w2_ref[...], preferred_element_type=jnp.float32)  # (TM, Dp)

    # Accumulate directly into the (VMEM-resident) output block.
    @pl.when(k == 0)
    def _():
        o_ref[...] = part + b2_ref[...]

    @pl.when(k != 0)
    def _():
        o_ref[...] = o_ref[...] + part


def feedforward(x, w1, b1, w2, b2, *, tm_target=512):
    """x: (..., dim). w1: (dim, 2H), b1: (1, 2H), w2: (H, dim), b2: (1, dim)."""
    dim = x.shape[-1]
    lead = x.shape[:-1]
    n = math.prod(lead) if lead else 1
    hidden = w2.shape[0]

    # ---- split w1/b1 into value / gate halves (contiguous operands) ----
    w1_val, w1_gate = w1[:, :hidden], w1[:, hidden:]
    b1_val, b1_gate = b1[:, :hidden], b1[:, hidden:]

    # ---- padded minor dims (lane 128 aligned) ----
    d_p = _round_up(dim, 128)
    h_128 = _round_up(hidden, 128)

    # ---- physical VMEM capacity (generation aware) ----
    try:
        vmem_cap = int(pltpu.get_tpu_info().vmem_capacity_bytes)
    except Exception:  # pragma: no cover - conservative fallback (v7x size)
        vmem_cap = 64 * 1024 * 1024
    vmem_budget = int(vmem_cap * 0.85)

    def vmem_bytes(tm_, th_):
        # Double-buffering counted exactly once per operand.
        return (
            2 * tm_ * d_p * 2           # x blocks        (bf16)
            + 2 * 2 * d_p * th_ * 2     # w1_val + w1_gate (bf16)
            + 2 * th_ * d_p * 2         # w2 blocks       (bf16)
            + 2 * 2 * th_ * 4           # b1 halves       (f32)
            + 2 * d_p * 4               # b2              (f32)
            + 2 * tm_ * d_p * 4         # out blocks (f32, resident accumulator)
        )

    # Rows: large tiles amortize weight streaming, but keep >= 2 row blocks so
    # the "parallel" axis feeds both v7x TensorCores.
    tm = min(tm_target, _round_up(n, 8))
    while tm > 8 and _round_up(n, tm) // tm < 2:
        tm = _round_up(tm // 2, 8)

    # Hidden: prefer the full hidden dim (single reduction step => constant
    # weight index_maps => weights DMA'd from HBM exactly once); shrink th,
    # then tm, until the working set fits the VMEM budget.
    th = h_128
    while th > 128 and vmem_bytes(tm, th) > vmem_budget:
        th = _round_up(th // 2, 128)
    while tm > 8 and vmem_bytes(tm, th) > vmem_budget:
        tm = _round_up(tm // 2, 8)

    h_p = _round_up(hidden, th)
    n_p = _round_up(n, tm)
    grid = (n_p // tm, h_p // th)

    # ---- cast + pad operands ----
    x2d = x.reshape(n, dim)

    def pad2(a, r, c, dtype):
        a = a.astype(dtype)
        pr, pc = r - a.shape[0], c - a.shape[1]
        if pr or pc:
            a = jnp.pad(a, ((0, pr), (0, pc)))
        return a

    x_p = pad2(x2d, n_p, d_p, jnp.bfloat16)
    w1v_p = pad2(w1_val, d_p, h_p, jnp.bfloat16)
    w1g_p = pad2(w1_gate, d_p, h_p, jnp.bfloat16)
    b1v_p = pad2(b1_val, 1, h_p, jnp.float32)
    b1g_p = pad2(b1_gate, 1, h_p, jnp.float32)
    w2_p = pad2(w2, h_p, d_p, jnp.bfloat16)
    b2_p = pad2(b2, 1, d_p, jnp.float32)

    vmem_limit = int(min(max(vmem_bytes(tm, th) + (4 << 20), 32 << 20),
                         int(vmem_cap * 0.9)))

    cost = pl.CostEstimate(
        flops=6 * n * dim * hidden,
        transcendentals=n * hidden,
        bytes_accessed=(2 * n * dim            # x  (bf16)
                        + 4 * n * dim          # out (f32)
                        + 6 * dim * hidden     # w1 + w2 (bf16)
                        + 4 * (2 * hidden + dim)),
    )

    out_p = pl.pallas_call(
        feedforward_kernel,
        out_shape=jax.ShapeDtypeStruct((n_p, d_p), jnp.float32),
        grid=grid,
        in_specs=[
            pl.BlockSpec((tm, d_p), lambda i, k: (i, 0)),   # x
            pl.BlockSpec((d_p, th), lambda i, k: (0, k)),   # w1_val
            pl.BlockSpec((d_p, th), lambda i, k: (0, k)),   # w1_gate
            pl.BlockSpec((1, th), lambda i, k: (0, k)),     # b1_val
            pl.BlockSpec((1, th), lambda i, k: (0, k)),     # b1_gate
            pl.BlockSpec((th, d_p), lambda i, k: (k, 0)),   # w2
            pl.BlockSpec((1, d_p), lambda i, k: (0, 0)),    # b2
        ],
        out_specs=pl.BlockSpec((tm, d_p), lambda i, k: (i, 0)),
        compiler_params=pltpu.CompilerParams(
            dimension_semantics=("parallel", "arbitrary"),
            vmem_limit_bytes=vmem_limit,
        ),
        cost_estimate=cost,
    )(x_p, w1v_p, w1g_p, b1v_p, b1g_p, w2_p, b2_p)

    out = out_p[:n, :dim]
    return out.reshape(*lead, dim)


def init_params(key, dim, mult=4):
    """Deterministic init matching nn.Linear shapes.

    PyTorch nn.Linear(dim, dim*mult*2) holds weight (2H, D); we store the
    transpose (D, 2H) so the kernel can do x @ w directly.
    """
    hidden = dim * mult
    k1, k2, k3, k4 = jax.random.split(key, 4)
    bound1 = 1.0 / math.sqrt(dim)
    bound2 = 1.0 / math.sqrt(hidden)
    w1 = jax.random.uniform(k1, (dim, 2 * hidden), jnp.float32, -bound1, bound1)
    b1 = jax.random.uniform(k2, (1, 2 * hidden), jnp.float32, -bound1, bound1)
    w2 = jax.random.uniform(k3, (hidden, dim), jnp.float32, -bound2, bound2)
    b2 = jax.random.uniform(k4, (1, dim), jnp.float32, -bound2, bound2)
    return w1, b1, w2, b2


if __name__ == "__main__":
    dim = 32
    mult = 4
    batch, seq = 2, 8

    key = jax.random.PRNGKey(0)
    kx, kp = jax.random.split(key)
    x = jax.random.normal(kx, (batch, seq, dim), dtype=jnp.float32)
    w1, b1, w2, b2 = init_params(kp, dim, mult)

    out = feedforward(x, w1, b1, w2, b2)
    out = jax.block_until_ready(out)

    # Reference check in plain JAX (same semantics as the PyTorch module,
    # computed in f32). bf16 MXU operands => relaxed tolerance.
    hid = dim * mult
    h = x @ w1 + b1[0]
    ref = (h[..., :hid] * jax.nn.gelu(h[..., hid:], approximate=False)) @ w2 + b2[0]
    assert out.shape == x.shape
    max_err = float(jnp.max(jnp.abs(out - ref)))
    assert max_err < 5e-2, f"max abs err {max_err}"

    print("KERNEL_OK")
</pallas_src>

<mosaic_0001>
module attributes {stable_mosaic.version = 11 : i64} {
  func.func @feedforward_kernel(%arg0: i32, %arg1: i32, %arg2: memref<8x128xbf16, #tpu.memory_space<vmem>>, %arg3: memref<128x128xbf16, #tpu.memory_space<vmem>>, %arg4: memref<128x128xbf16, #tpu.memory_space<vmem>>, %arg5: memref<1x128xf32, #tpu.memory_space<vmem>>, %arg6: memref<1x128xf32, #tpu.memory_space<vmem>>, %arg7: memref<128x128xbf16, #tpu.memory_space<vmem>>, %arg8: memref<1x128xf32, #tpu.memory_space<vmem>>, %arg9: memref<8x128xf32, #tpu.memory_space<vmem>>) attributes {dimension_semantics = [#tpu.dimension_semantics<parallel>, #tpu.dimension_semantics<arbitrary>], iteration_bounds = array<i64: 2, 1>, scalar_prefetch = 0 : i64, scratch_operands = 0 : i64, tpu.core_type = #tpu.core_type<tc>, window_params = [{transform_indices = @transform_0, window_bounds = array<i64: 8, 128>}, {transform_indices = @transform_1, window_bounds = array<i64: 128, 128>}, {transform_indices = @transform_2, window_bounds = array<i64: 128, 128>}, {transform_indices = @transform_3, window_bounds = array<i64: 1, 128>}, {transform_indices = @transform_4, window_bounds = array<i64: 1, 128>}, {transform_indices = @transform_5, window_bounds = array<i64: 128, 128>}, {pipeline_mode = #tpu.pipeline_mode<synchronous>, transform_indices = @transform_6, window_bounds = array<i64: 1, 128>}, {transform_indices = @transform_7, window_bounds = array<i64: 8, 128>}]} {
    %c0 = arith.constant 0 : index
    %c0_0 = arith.constant 0 : index
    %0 = vector.load %arg2[%c0, %c0_0] : memref<8x128xbf16, #tpu.memory_space<vmem>>, vector<8x128xbf16>
    %c0_1 = arith.constant 0 : index
    %c0_2 = arith.constant 0 : index
    %1 = vector.load %arg3[%c0_1, %c0_2] : memref<128x128xbf16, #tpu.memory_space<vmem>>, vector<128x128xbf16>
    %cst = arith.constant dense<0.000000e+00> : vector<8x128xf32>
    %2 = tpu.matmul %0, %1, %cst {dimension_numbers = #tpu.dot_dimension_numbers<[1], [0], [0], [1], [0, 0, 1, 1], [], []>} : vector<8x128xbf16>, vector<128x128xbf16>, vector<8x128xf32> -> vector<8x128xf32>
    %c0_3 = arith.constant 0 : index
    %c0_4 = arith.constant 0 : index
    %3 = vector.load %arg5[%c0_3, %c0_4] : memref<1x128xf32, #tpu.memory_space<vmem>>, vector<1x128xf32>
    %4 = vector.broadcast %3 : vector<1x128xf32> to vector<8x128xf32>
    %5 = arith.addf %2, %4 : vector<8x128xf32>
    %c0_5 = arith.constant 0 : index
    %c0_6 = arith.constant 0 : index
    %6 = vector.load %arg4[%c0_5, %c0_6] : memref<128x128xbf16, #tpu.memory_space<vmem>>, vector<128x128xbf16>
    %cst_7 = arith.constant dense<0.000000e+00> : vector<8x128xf32>
    %7 = tpu.matmul %0, %6, %cst_7 {dimension_numbers = #tpu.dot_dimension_numbers<[1], [0], [0], [1], [0, 0, 1, 1], [], []>} : vector<8x128xbf16>, vector<128x128xbf16>, vector<8x128xf32> -> vector<8x128xf32>
    %c0_8 = arith.constant 0 : index
    %c0_9 = arith.constant 0 : index
    %8 = vector.load %arg6[%c0_8, %c0_9] : memref<1x128xf32, #tpu.memory_space<vmem>>, vector<1x128xf32>
    %9 = vector.broadcast %8 : vector<1x128xf32> to vector<8x128xf32>
    %10 = arith.addf %7, %9 : vector<8x128xf32>
    %cst_10 = arith.constant 5.000000e-01 : f32
    %11 = vector.broadcast %cst_10 : f32 to vector<8x128xf32>
    %12 = arith.mulf %11, %10 : vector<8x128xf32>
    %cst_11 = arith.constant 0.707106769 : f32
    %13 = vector.broadcast %cst_11 : f32 to vector<8x128xf32>
    %14 = arith.mulf %10, %13 : vector<8x128xf32>
    %15 = math.erf %14 : vector<8x128xf32>
    %cst_12 = arith.constant 1.000000e+00 : f32
    %16 = vector.broadcast %cst_12 : f32 to vector<8x128xf32>
    %17 = arith.addf %16, %15 : vector<8x128xf32>
    %18 = arith.mulf %12, %17 : vector<8x128xf32>
    %19 = arith.mulf %5, %18 : vector<8x128xf32>
    %20 = arith.truncf %19 : vector<8x128xf32> to vector<8x128xbf16>
    %c0_13 = arith.constant 0 : index
    %c0_14 = arith.constant 0 : index
    %21 = vector.load %arg7[%c0_13, %c0_14] : memref<128x128xbf16, #tpu.memory_space<vmem>>, vector<128x128xbf16>
    %cst_15 = arith.constant dense<0.000000e+00> : vector<8x128xf32>
    %22 = tpu.matmul %20, %21, %cst_15 {dimension_numbers = #tpu.dot_dimension_numbers<[1], [0], [0], [1], [0, 0, 1, 1], [], []>} : vector<8x128xbf16>, vector<128x128xbf16>, vector<8x128xf32> -> vector<8x128xf32>
    %c0_i32 = arith.constant 0 : i32
    %23 = arith.cmpi eq, %arg1, %c0_i32 : i32
    %24 = arith.extui %23 : i1 to i32
    %c0_i32_16 = arith.constant 0 : i32
    %25 = arith.cmpi ne, %24, %c0_i32_16 : i32
    scf.if %25 {
      %c0_19 = arith.constant 0 : index
      %c0_20 = arith.constant 0 : index
      %29 = vector.load %arg8[%c0_19, %c0_20] : memref<1x128xf32, #tpu.memory_space<vmem>>, vector<1x128xf32>
      %30 = vector.broadcast %29 : vector<1x128xf32> to vector<8x128xf32>
      %31 = arith.addf %22, %30 : vector<8x128xf32>
      %c0_21 = arith.constant 0 : index
      %c0_22 = arith.constant 0 : index
      %32 = vector.load %arg9[%c0_21, %c0_22] : memref<8x128xf32, #tpu.memory_space<vmem>>, vector<8x128xf32>
      tpu.vector_store %arg9[%c0_21, %c0_22], %31 {strides = array<i32>} : memref<8x128xf32, #tpu.memory_space<vmem>>, vector<8x128xf32>,
    } else {
    }
    %c0_i32_17 = arith.constant 0 : i32
    %26 = arith.cmpi ne, %arg1, %c0_i32_17 : i32
    %27 = arith.extui %26 : i1 to i32
    %c0_i32_18 = arith.constant 0 : i32
    %28 = arith.cmpi ne, %27, %c0_i32_18 : i32
    scf.if %28 {
      %c0_19 = arith.constant 0 : index
      %c0_20 = arith.constant 0 : index
      %29 = vector.load %arg9[%c0_19, %c0_20] : memref<8x128xf32, #tpu.memory_space<vmem>>, vector<8x128xf32>
      %30 = arith.addf %29, %22 : vector<8x128xf32>
      %c0_21 = arith.constant 0 : index
      %c0_22 = arith.constant 0 : index
      %31 = vector.load %arg9[%c0_21, %c0_22] : memref<8x128xf32, #tpu.memory_space<vmem>>, vector<8x128xf32>
      tpu.vector_store %arg9[%c0_21, %c0_22], %30 {strides = array<i32>} : memref<8x128xf32, #tpu.memory_space<vmem>>, vector<8x128xf32>,
    } else {
    }
    return
  }
  func.func @transform_0(%arg0: i32, %arg1: i32) -> (i32, i32) {
    %c0_i32 = arith.constant 0 : i32
    %c0_i32_0 = arith.constant 0 : i32
    return %arg0, %c0_i32 : i32, i32
  }
  func.func @transform_1(%arg0: i32, %arg1: i32) -> (i32, i32) {
    %c0_i32 = arith.constant 0 : i32
    %c0_i32_0 = arith.constant 0 : i32
    return %c0_i32, %arg1 : i32, i32
  }
  func.func @transform_2(%arg0: i32, %arg1: i32) -> (i32, i32) {
    %c0_i32 = arith.constant 0 : i32
    %c0_i32_0 = arith.constant 0 : i32
    return %c0_i32, %arg1 : i32, i32
  }
  func.func @transform_3(%arg0: i32, %arg1: i32) -> (i32, i32) {
    %c0_i32 = arith.constant 0 : i32
    %c0_i32_0 = arith.constant 0 : i32
    return %c0_i32, %arg1 : i32, i32
  }
  func.func @transform_4(%arg0: i32, %arg1: i32) -> (i32, i32) {
    %c0_i32 = arith.constant 0 : i32
    %c0_i32_0 = arith.constant 0 : i32
    return %c0_i32, %arg1 : i32, i32
  }
  func.func @transform_5(%arg0: i32, %arg1: i32) -> (i32, i32) {
    %c0_i32 = arith.constant 0 : i32
    %c0_i32_0 = arith.constant 0 : i32
    return %arg1, %c0_i32 : i32, i32
  }
  func.func @transform_6(%arg0: i32, %arg1: i32) -> (i32, i32) {
    %c0_i32 = arith.constant 0 : i32
    %c0_i32_0 = arith.constant 0 : i32
    %c0_i32_1 = arith.constant 0 : i32
    return %c0_i32, %c0_i32_0 : i32, i32
  }
  func.func @transform_7(%arg0: i32, %arg1: i32) -> (i32, i32) {
    %c0_i32 = arith.constant 0 : i32
    %c0_i32_0 = arith.constant 0 : i32
    return %arg0, %c0_i32 : i32, i32
  }
}

</mosaic_0001>

<bundles_post_ra>
// kernel: tpu_custom_call.1
= control target key start
LH: loop header
LB: loop body
LE: loop exit
PB: predicated region body
PF: predicated region fallthrough
CT: control target
= control target key end

     0   :  { %s1544_s0 = inlined_call_operand.hbm [shape: bf16[16,128], index: 0, kind: input, shape index: {}]   ;;  %s1545_s1 = inlined_call_operand.hbm [shape: bf16[128,128], index: 1, kind: input, shape index: {}]   ;;  %s1546_s2 = inlined_call_operand.hbm [shape: bf16[128,128], index: 2, kind: input, shape index: {}]   ;;  %s1547_s3 = inlined_call_operand.vmem [shape: f32[1,128], index: 3, kind: input, shape index: {}]   ;;  %s1548_s4 = inlined_call_operand.vmem [shape: f32[1,128], index: 4, kind: input, shape index: {}]   ;;  %s1549_s5 = inlined_call_operand.hbm [shape: bf16[128,128], index: 5, kind: input, shape index: {}]   ;;  %s1550_s6 = inlined_call_operand.vmem [shape: f32[1,128], index: 6, kind: input, shape index: {}]   ;;  %s1551_s7 = inlined_call_operand.hbm [shape: f32[16,128], index: 7, kind: output, shape index: {}]  }
   0x1   :  { %1552 = sst [smem:[#allocation15_spill]] %s1545_s1 }
   0x2   :  { %1553 = sst [smem:[#allocation16_spill]] %s1546_s2 }
   0x3   :  { %12 = vsyncpa [#allocation3], 0 }
   0x4   :  { %14 = vsyncpa [#allocation3 + $0x1], 0 }
   0x5   :  { %15 = vsyncpa [#allocation6], 0 }
   0x6   :  { %16 = vsyncpa [#allocation9], 0 }
   0x7   :  { %17 = vsyncpa [#allocation4], 0 }
   0x8   :  { %19 = vsyncpa [#allocation4 + $0x1], 0  ;;  %s1364_s24 = smov 0   ;;  %s1366_s25 = smov 0  }
   0x9   :  { %s1368_s26 = smov 0   ;;  %s1370_s27 = smov 0  }
   0xa   :  { %s1372_s28 = smov 0   ;;  %s1374_s29 = smov 0  }
   0xb LB: > { %s865_s30 = sadd.s32 4294967295, %s1317_s29   ;;  %p867_p0 = scmp.ge.s32.totalorder %s1317_s29, 1  ;;  %s1317_s29 = sphi %s1374_s29, %s25_s29   ;;  %s1313_s28 = sphi %s1372_s28, %s1567_s28   ;;  %s1309_s27 = sphi %s1370_s27, %s1566_s27   ;;  %s1305_s26 = sphi %s1368_s26, %s1565_s26   ;;  %s1301_s25 = sphi %s1366_s25, %s1564_s25   ;;  %s1297_s24 = sphi %s1364_s24, %s1563_s24  }
   0xc   : > { %p1398_p1 = scmp.eq.s32.totalorder %s865_s30, 0  ;;  %p245_p2 = scmp.lt.s32.totalorder %s1317_s29, 3 }
   0xd   : > { %s1555_s1 = sld [smem:[#allocation15_spill]]  ;;  %s1319_s13 = smov [#allocation5]  }
   0xe   : > { %p1406_p3 = pnand %p867_p0, %p245_p2  ;;  %s260_s14 = sshll.u32 %s1319_s13, 4  ;;  %s261_s14 = int_to_ptr.vmem [resolvable:$true] %s260_s14 }
   0xf   : > { %p873_p6 = scmp.ge.s32.totalorder %s1317_s29, 2  ;;  %s1558_s2 = sld [smem:[#allocation16_spill]] }
  0x10   : > { %p1023_p4 = pneg %p1406_p3  ;;  %s1320_s19 = smov 64  }
  0x11   : > { %s1321_s20 = smov 4   ;;  %s1322_s21 = smov [#allocation7]  }
  0x12   : > { %p1414_p5 = pnand %p1023_p4, %p1398_p1  ;;  %s276_s22 = sshll.u32 %s1322_s21, 4  ;;  %s277_s22 = int_to_ptr.vmem [resolvable:$true] %s276_s22 }
  0x13   : > { %s258_s11 = sshll.u32 %s1555_s1, 4  ;;  %s303_s10 = sshll.u32 %s1549_s5, 4  ;;  %s259_s11 = int_to_ptr.hbm [resolvable:$true] %s258_s11  ;;  %s304_s10 = int_to_ptr.hbm [resolvable:$true] %s303_s10 }
  0x14   : > { %1026 = dma.hbm_to_vmem [thread:$0]  (!%p1414_p5), %s259_s11, 1024, %s261_s14, [#allocation6], %s1320_s19, %s1320_s19, %s1321_s20  }
  0x15   : > { %s274_s18 = sshll.u32 %s1558_s2, 4  ;;  %s1323_s13 = smov [#allocation8]   ;;  %s275_s18 = int_to_ptr.hbm [resolvable:$true] %s274_s18 }
  0x16   : > { %1029 = dma.hbm_to_vmem [thread:$0]  (!%p1414_p5), %s275_s18, 1024, %s277_s22, [#allocation6], %s1320_s19, %s1320_s19, %s1321_s20  }
  0x17   : > { %s305_s16 = sshll.u32 %s1323_s13, 4  ;;  %s866_s11 = sadd.s32 4294967294, %s1317_s29   ;;  %s306_s16 = int_to_ptr.vmem [resolvable:$true] %s305_s16 }
  0x18   : > { %1032 = dma.hbm_to_vmem [thread:$0]  (!%p1414_p5), %s304_s10, 1024, %s306_s16, [#allocation9], %s1320_s19, %s1320_s19, %s1321_s20  }
  0x19   : > { %s37_s14 = sadd.s32 1, %s1313_s28  ;;  %s44_s17 = sadd.s32 1, %s1305_s26 }
  0x1a   : > { %p39_p7 = scmp.ge.s32.totalorder %s37_s14, 2  ;;  %p51_p8 = scmp.ne.s32.totalorder %s1305_s26, %s1301_s25 }
  0x1b   : > { %p52_p9 = scmp.eq.s32.totalorder %s1317_s29, 0  ;;  %p57_p10 = scmp.ne.s32.totalorder %s1301_s25, %s1297_s24 }
  0x1c   : > { %s1569_s14 = smov (%p39_p7, %s37_s14), 0  ;;  %p232_p13 = scmp.eq.s32.totalorder %s865_s30, 1 }
  0x1d   : > { %p1441_p11 = por %p52_p9, %p51_p8  ;;  %p1447_p12 = por %p1398_p1, %p57_p10 }
  0x1e   : > { %s41_s19 = ssub.s32 %s1313_s28, %s1569_s14  ;;  %p238_p2 = scmp.eq.s32.totalorder %s866_s11, 1 }
  0x1f   : > { %p42_p0 = scmp.eq.s32.totalorder %s41_s19, 0  ;;  %p1455_p4 = por %p232_p13, %p51_p8 }
  0x20   : > { %p1044_p5 = scmp.lt.s32.totalorder %s1317_s29, 2  ;;  %p1463_p7 = por %p238_p2, %p57_p10 }
  0x21   : > { %s1461_s21 = scalar_select %p42_p0, %s1305_s26, %s44_s17  }
  0x22   : > { %s322_s23 = sand.u32 1, %s1305_s26   ;;  %s875_s10 = sshll.u32 %s1313_s28, 2 }
  0x23   : > { %s874_s9 = sshll.u32 %s322_s23, 2  ;;  %s330_s30 = scalar_lea.hbm %s1544_s0, %s875_s10 }
  0x24   : > { %s326_s19 = scalar_lea.vmem [#allocation2], %s874_s9  ;;  %s332_s1 = sshll.u32 %s330_s30, 4  ;;  %s333_s1 = int_to_ptr.hbm [resolvable:$true] %s332_s1 }
  0x25   : > { %s334_s11 = sshll.u32 %s326_s19, 4  ;;  %p1034_p8 = pnand %p1044_p5, %p1441_p11  ;;  %s335_s11 = int_to_ptr.vmem [resolvable:$true] %s334_s11 }
  0x26   : > { %s323_s17 = scalar_lea.sflag [#allocation3], %s322_s23  ;;  %343 = sbr.rel (%p1406_p3) target bundleno = 403 (0x193), region = 48 }
  0x27   : > { %1036 = dma.hbm_to_vmem [thread:$0]  (!%p1034_p8), %s333_s1, 64, %s335_s11, %s323_s17  }
  0x28   : > { %s1477_s2 = sand.u32 (!%p1406_p3), 1, %s1301_s25  }
  0x29   : > { %s877_s13 = sshll.u32 (!%p1406_p3), %s1477_s2, 2  ;;  %s346_s10 = scalar_lea.sflag (!%p1406_p3), [#allocation3], %s1477_s2 }
  0x2a   : > { %s1481_s9 = scalar_lea.vmem (!%p1406_p3), [#allocation2], %s877_s13 }
  0x2b   : > { %1280 = dma.done.wait (%p1447_p12), %s346_s10, 64  }
  0x2c   : > { %1282 = vsyncadd (%p1447_p12), %s346_s10, 4294967232 }
  0x2d   : > { %1284 = dma.done.wait (%p1398_p1), [#allocation6], 2048  }
  0x2e   : > { %1286 = vsyncadd (%p1398_p1), [#allocation6], 4294965248 }
  0x2f   : > { %1288 = dma.done.wait (%p1398_p1), [#allocation9], 1024  }
  0x30   : > { %1290 = vsyncadd (%p1398_p1), [#allocation9], 4294966272  ;;  %v998_v0 = vld [vmem:[#allocation7 + $0x38] sm:$0xff]  ;;  %v997_v1 = vld [vmem:[#allocation7 + $0x30] sm:$0xff]  ;;  %s980_s15 = sshll.u32 %s1309_s27, 3  ;;  %s881_s23 = sshll.u32 %s1477_s2, 3 }
  0x31   : > { %559 = vmatpush.bf16.msra.mxu1 %v998_v0  ;;  %v990_v2 = vld [vmem:[#allocation5 + $0x38] sm:$0xff]  ;;  %v989_v3 = vld [vmem:[#allocation5 + $0x30] sm:$0xff]  ;;  %v996_v4 = vld [vmem:[#allocation7 + $0x28] sm:$0xff]  ;;  %s723_s19 = scalar_lea.hbm %s1551_s7, %s980_s15  ;;  %s401_s13 = scalar_lea.vmem [#allocation10], %s881_s23 }
  0x32   : > { %478 = vmatpush.bf16.msra.mxu0 %v990_v2  ;;  %v988_v5 = vld [vmem:[#allocation5 + $0x28] sm:$0xff]  ;;  %v995_v6 = vld [vmem:[#allocation7 + $0x20] sm:$0xff]  ;;  %v994_v8 = vld [vmem:[#allocation7 + $0x18] sm:$0xff]  ;;  %s725_s10 = sshll.u32 %s401_s13, 4  ;;  %s713_s1 = scalar_lea.sflag [#allocation4], %s1477_s2  ;;  %s726_s10 = int_to_ptr.vmem [resolvable:$true] %s725_s10 }
  0x33   : > { %v987_v7 = vld [vmem:[#allocation5 + $0x20] sm:$0xff]  ;;  %v986_v9 = vld [vmem:[#allocation5 + $0x18] sm:$0xff]  ;;  %v993_v10 = vld [vmem:[#allocation7 + $0x10] sm:$0xff]  ;;  %s1247_s15 = scalar_lea.hbm %s1551_s7, 16 }
  0x34   : > { %v985_v11 = vld [vmem:[#allocation5 + $0x10] sm:$0xff]  ;;  %v992_v12 = vld [vmem:[#allocation7 + $0x8] sm:$0xff]  ;;  %v991_v14 = vld [vmem:[#allocation7] sm:$0xff] }
  0x35   : > { %560 = vmatpush.bf16.msra.mxu1 %v997_v1  ;;  %v984_v13 = vld [vmem:[#allocation5 + $0x8] sm:$0xff]  ;;  %v983_v15 = vld [vmem:[#allocation5] sm:$0xff]  ;;  %v409_v16 = vld [vmem:[%s1481_s9] sm:$0xf]  ;;  %s727_s9 = sshll.u32 %s723_s19, 4  ;;  %s728_s9 = int_to_ptr.hbm [resolvable:$true] %s727_s9 }
  0x36   : > { %479 = vmatpush.bf16.msra.mxu0 %v989_v3  ;;  %v1006_v17 = vld [vmem:[#allocation8 + $0x38] sm:$0xff]  ;;  %v1005_v19 = vld [vmem:[#allocation8 + $0x30] sm:$0xff]  ;;  %v1004_v22 = vld [vmem:[#allocation8 + $0x28] sm:$0xff]  ;;  %s1241_s27 = sshra.s32 %s728_s9, 4  ;;  %s1242_s27 = int_to_ptr.hbm [resolvable:$true] %s1241_s27 }
  0x37   : > { %682 = vmatpush.bf16.msra.mxu2 %v1006_v17  ;;  %v1102_v18 = vld [vmem:[%s1548_s4] ss:$0 sm:$0xff]  ;;  %v1003_v25 = vld [vmem:[#allocation8 + $0x20] sm:$0xff]  ;;  %v1001_v36 = vld [vmem:[#allocation8 + $0x10] sm:$0xff]  ;;  %s1243_s8 = scalar_lea.hbm %s1242_s27, 8  ;;  %p1248_p10 = scmp.lt.s32.totalorder %s1242_s27, %s1551_s7 }
  0x38   : > { %v1002_v30 = vld [vmem:[#allocation8 + $0x18] sm:$0xff]  ;;  %v1000_v39 = vld [vmem:[#allocation8 + $0x8] sm:$0xff]  ;;  %v999_v44 = vld [vmem:[#allocation8] sm:$0xff]  ;;  %p1244_p1 = scmp.ne.s32.totalorder %s1242_s27, %s1243_s8  ;;  %p1249_p11 = scmp.lt.s32.totalorder %s1247_s15, %s1243_s8 }
  0x39   : > { %561 = vmatpush.bf16.msra.mxu1 %v996_v4  ;;  %v1103_v2 = vld [vmem:[%s1547_s3] ss:$0 sm:$0xff] }
  0x3a   : > { %480 = vmatpush.bf16.msra.mxu0 %v988_v5  ;;  %p1245_p3 = pnand %p1244_p1, %p1455_p4  ;;  %p1250_p12 = por %p1249_p11, %p1248_p10 }
  0x3b   : > { %683 = vmatpush.bf16.msra.mxu2 %v1005_v19 }
  0x3c   : > { %p1246_p9 = pneg %p1245_p3 }
  0x3d   : > { %562 = vmatpush.bf16.msra.mxu1 %v995_v6 }
  0x3e   : > { %481 = vmatpush.bf16.msra.mxu0 %v987_v7  ;;  %p1251_p13 = pnand %p1250_p12, %p1246_p9 }
  0x3f   : > { %684 = vmatpush.bf16.msra.mxu2 %v1004_v22 }
  0x41   : > { %563 = vmatpush.bf16.msra.mxu1 %v994_v8 }
  0x42   : > { %482 = vmatpush.bf16.msra.mxu0 %v986_v9 }
  0x43   : > { %685 = vmatpush.bf16.msra.mxu2 %v1003_v25 }
  0x45   : > { %564 = vmatpush.bf16.msra.mxu1 %v993_v10  ;;  %v1104_v10 = vld [vmem:[%s1550_s6] ss:$0 sm:$0xff] }
  0x46   : > { %483 = vmatpush.bf16.msra.mxu0 %v985_v11 }
  0x47   : > { %686 = vmatpush.bf16.msra.mxu2 %v1002_v30 }
  0x49   : > { %565 = vmatpush.bf16.msra.mxu1 %v992_v12 }
  0x4a   : > { %484 = vmatpush.bf16.msra.mxu0 %v984_v13 }
  0x4b   : > { %687 = vmatpush.bf16.msra.mxu2 %v1001_v36 }
  0x4d   : > { %566 = vmatpush.bf16.msra.mxu1 %v991_v14 }
  0x4e   : > { %485 = vmatpush.bf16.msra.mxu0 %v983_v15 }
  0x4f   : > { %688 = vmatpush.bf16.msra.mxu2 %v1000_v39 }
  0x50   : > { %567 = vmatmul.bf16.vlgmr.msra.gmra.mxu1 %v409_v16 }
  0x51   : > { %486 = vmatmul.bf16.vlgmr.msra.gmra.mxu0 %v409_v16 }
  0x53   : > { %689 = vmatpush.bf16.msra.mxu2 %v999_v44 }
  0xcd   : > { %v568_v20 = vpop.f32.mrf.mxu1 }
  0xce   : > { %v569_v21 = vadd.f32 %v1102_v18, %v568_v20  ;;  %v487_v33 = vpop.f32.mrf.mxu0 }
  0xcf   : > { %v488_v5 = vadd.f32 %v1103_v2, %v487_v33 }
  0xd0   : > { %v573_v23 = vmul.f32 0.70710677, %v569_v21  ;;  %v572_v4 = vmul.f32 0.5, %v569_v21 }
  0xd2   : > { %v574_v24 = vmul.f32 %v573_v23, %v573_v23 }
  0xd4   : > { %v575_v26 = vmin.f32 %v574_v24, 16.0 }
  0xd5   : > { %v570_v27 = vpop.f32.mrf.mxu1 }
  0xd6   : > { %v576_v28 = vmul.f32 2.1237322e-06, %v575_v26  ;;  %v587_v29 = vmul.f32 3.8918573e-05, %v575_v26  ;;  %v489_v43 = vpop.f32.mrf.mxu0 }
  0xd8   : > { %v577_v31 = vadd.f32 0.00028619796, %v576_v28  ;;  %v588_v32 = vadd.f32 0.001143296, %v587_v29 }
  0xda   : > { %v578_v34 = vmul.f32 %v577_v31, %v575_v26  ;;  %v589_v35 = vmul.f32 %v588_v32, %v575_v26 }
  0xdc   : > { %v590_v37 = vadd.f32 0.014752088, %v589_v35  ;;  %v579_v38 = vadd.f32 0.0036580483, %v578_v34 }
  0xde   : > { %v591_v40 = vmul.f32 %v590_v37, %v575_v26  ;;  %v580_v42 = vmul.f32 %v579_v38, %v575_v26 }
  0xe0   : > { %v592_v41 = vadd.f32 0.112945676, %v591_v40  ;;  %v581_v47 = vadd.f32 0.05243302, %v580_v42 }
  0xe2   : > { %v593_v45 = vmul.f32 %v592_v41, %v575_v26  ;;  %v582_v50 = vmul.f32 %v581_v47, %v575_v26 }
  0xe4   : > { %v594_v46 = vadd.f32 0.4994258, %v593_v45  ;;  %v583_v51 = vadd.f32 0.18741608, %v582_v50 }
  0xe6   : > { %v595_v48 = vmul.f32 %v594_v46, %v575_v26  ;;  %v584_v53 = vmul.f32 %v583_v51, %v575_v26 }
  0xe8   : > { %v596_v49 = vadd.f32 1.0, %v595_v48  ;;  %v585_v57 = vadd.f32 1.1283791, %v584_v53 }
  0xea   : > { %1105 = vrcp.f32 %v596_v49  ;;  %v608_v56 = vand.u32 2147483648, %v596_v49  ;;  %v606_v59 = vand.u32 2147483647, %v596_v49  ;;  %vm602_vm1 = vweird.f32 %v596_v49 }
  0xeb   : > { %v586_v62 = vmul.f32 %v585_v57, %v573_v23 }
  0xec   : > { %v609_v61 = vor.u32 1.1754944e-38, %v608_v56  ;;  %vm607_vm3 = vcmp.eq.f32.partialorder %v606_v59, 8.507059e+37 }
  0xf0   : > { %v1106_v52 = vpop.eup %1105 }
  0xf1   : > { %v598_v54 = vmul.f32 %v1106_v52, %v596_v49  ;;  %vm603_vm0 = vweird.f32 %v1106_v52 }
  0xf2   : > { %vm604_vm2 = vmor %vm602_vm1, %vm603_vm0 }
  0xf3   : > { %v599_v55 = vsub.f32 1.0, %v598_v54 }
  0xf5   : > { %v600_v58 = vmul.f32 %v1106_v52, %v599_v55 }
  0xf7   : > { %v601_v60 = vadd.f32 %v1106_v52, %v600_v58 }
  0xf9   : > { %v605_v63 = vsel %vm604_vm2, %v1106_v52, %v601_v60 }
  0xfa   : > { %v610_v0 = vsel %vm607_vm3, %v609_v61, %v605_v63 }
  0xfb   : > { %v611_v1 = vmul.f32 %v610_v0, %v586_v62 }
  0xfd   : > { %v946_v3 = vclamps-f32 %v611_v1, 1.0 }
  0xff   : > { %v614_v6 = vadd.f32 1.0, %v946_v3 }
 0x101   : > { %v615_v7 = vmul.f32 %v614_v6, %v572_v4 }
 0x103   : > { %v616_v8 = vmul.f32 %v615_v7, %v488_v5 }
 0x105   : > { %v617_v9 = vpack.c.bf16 %v616_v8, %v616_v8 }
 0x107   : > { %690 = vmatmul.bf16.vlgmr.msra.gmra.mxu2 %v617_v9 }
 0x18a   : > { %v691_v11 = vpop.f32.mrf.mxu2 }
 0x18b   : > { %v703_v12 = vadd.f32 %v1104_v10, %v691_v11 }
 0x18d   : > { %704 = vst [vmem:[%s401_s13] sm:$0xff] %v703_v12 }
 0x18e   : > { %1254 = shalt.err (!%p1251_p13)
}
 0x18f   : > { %1021 = dma.vmem_to_hbm [thread:$0]  (%p1455_p4), %s726_s10, 128, %s728_s9, %s713_s1  }
 0x192   : > { %v693_v13 = vpop.f32.mrf.mxu2 }
 0x193 PF: > { %s739_s2 = sand.u32 1, %s1297_s24   ;;  %p1038_p0 = pnand %p873_p6, %p1463_p7 }
 0x194   : > { %s740_s30 = scalar_lea.sflag [#allocation4], %s739_s2 }
 0x195   : > { %p1039_p2 = pneg %p1038_p0 }
 0x197   : > { %1292 = dma.done.wait (%p1039_p2), %s740_s30, 128  }
 0x198   : > { %1294 = vsyncadd (%p1039_p2), %s740_s30, 4294967168  ;;  %s25_s29 = sadd.s32 1, %s1317_s29   ;;  %s1563_s24 = smov %s1301_s25 }
 0x199   : > { %p22_p5 = scmp.ge.s32.totalorder %s25_s29, 4   ;;  %s1564_s25 = smov %s1305_s26 }
 0x19a   : > { %s1565_s26 = smov %s1461_s21  ;;  %s1566_s27 = smov %s1313_s28 }
 0x19b   : > { %s1567_s28 = smov %s1569_s14  ;;  %24 = sbr.rel (!%p22_p5) target bundleno = 11 (0xb), region = 122 }
 0x1a0   :  { %746 = vsyncpa [#allocation3], 1 }
 0x1a1   :  { %748 = vsyncpa [#allocation3 + $0x1], 1 }
 0x1a2   :  { %749 = vsyncpa [#allocation6], 1 }
 0x1a3   :  { %750 = vsyncpa [#allocation9], 1 }
 0x1a4   :  { %751 = vsyncpa [#allocation4], 1 }
 0x1a5   :  { %753 = vsyncpa [#allocation4 + $0x1], 1 }

</bundles_post_ra>
